<compile_context>
chip_gen: v7x
topology: tpu7x:2x2x1
jax: 0.10.0
libtpu: 0.0.40
codegen_flags: <defaults>
</compile_context>

<pallas_src>
import numpy as np
import jax
import jax.numpy as jnp
from jax import lax
from jax.experimental import pallas as pl
from jax.experimental.pallas import tpu as pltpu

BN_EPS = 1e-5
LANE = 128


def _round_up(x, m):
    return (x + m - 1) // m * m


def _vmem_limit_bytes(in_tile_bytes, out_tile_bytes, resident_bytes):
    # Double-buffered input/output tiles + resident weight/bias + generous headroom,
    # clamped to 32 MiB so it fits every generation (v7x: 64 MiB physical / 32 MiB scoped).
    need = 2 * in_tile_bytes + 2 * out_tile_bytes + resident_bytes
    return int(min(max(4 * need, 16 << 20), 32 << 20))


# ------------------------------- Pallas kernels ------------------------------
def conv1x1_bn_nchw_kernel(x_ref, w_ref, b_ref, o_ref):
    """Channels-first tile:  o = W_T @ x  + bias  (BN folded).

    x_ref : (Cin, THW)   f32   activation tile (one image, spatial tile on lanes)
    w_ref : (Cout, Cin)  bf16  conv weight with BN scale folded in (transposed)
    b_ref : (Cout, 1)    f32   folded BN bias (broadcast over lanes)
    o_ref : (Cout, THW)  out_dtype
    """
    x = x_ref[...].astype(jnp.bfloat16)                       # cast at the VMEM tile, not in HBM
    acc = jnp.dot(w_ref[...], x, preferred_element_type=jnp.float32)
    o_ref[...] = (acc + b_ref[...]).astype(o_ref.dtype)


def conv1x1_bn_nhwc_kernel(x_ref, w_ref, b_ref, o_ref):
    """Channels-last tile:  o = x @ W  + bias  (BN folded).

    x_ref : (TM, Cin)       f32
    w_ref : (Cin, Cout_p)   bf16
    b_ref : (1, Cout_p)     f32
    o_ref : (TM, Cout_p)    out_dtype  (lane-dense: Cout padded to 128)
    """
    x = x_ref[...].astype(jnp.bfloat16)
    acc = jnp.dot(x, w_ref[...], preferred_element_type=jnp.float32)
    o_ref[...] = (acc + b_ref[...]).astype(o_ref.dtype)


# --------------------------------- wrappers ----------------------------------
def conv1x1_linear_forward(x_nchw, params, stride=1, thw_max=1024,
                           out_dtype=jnp.bfloat16):
    """PyTorch-layout (NCHW) entry point — consumes and produces NCHW directly.

    x_nchw: (N, Cin, H, W) f32. Returns (N, Cout, H_out, W_out) out_dtype.
    """
    w_t = params["w_t_folded"]           # (Cout, Cin) bf16
    b = params["b_col"]                  # (Cout, 1)   f32
    cin = params["in_channels"]
    cout = params["out_channels"]

    if stride > 1:
        # 1x1 kernel, padding=0  ->  strided conv == exact spatial subsampling.
        # TODO(synk): this subsampling is an extra XLA copy pass; fold into the kernel's
        #             index_map if strided 1x1 convs become hot.
        x_nchw = x_nchw[:, :, ::stride, ::stride]

    N, C, H, W = x_nchw.shape
    assert C == cin
    HW = H * W
    x3 = x_nchw.reshape(N, C, HW)        # contiguous reshape, no copy

    # Spatial tiling: one full-extent tile when small, else 128-aligned tiles.
    if HW <= thw_max:
        thw, hw_p = HW, HW
    else:
        thw = max(thw_max - thw_max % LANE, LANE)
        hw_p = _round_up(HW, thw)
    n_hw = hw_p // thw
    # v7x has 2 TensorCores: prefer a grid trip count >= 2 when cheaply possible.
    if N * n_hw < 2 and HW % (2 * LANE) == 0:
        thw = HW // 2
        hw_p, n_hw = HW, 2

    if hw_p != HW:
        x3 = jnp.pad(x3, ((0, 0), (0, 0), (0, hw_p - HW)))

    out_isize = jnp.dtype(out_dtype).itemsize
    grid = (N, n_hw)
    cost = pl.CostEstimate(
        flops=2 * N * cout * cin * hw_p,
        transcendentals=0,
        bytes_accessed=(N * cin * hw_p * 4 + w_t.size * 2 + b.size * 4
                        + N * cout * hw_p * out_isize),
    )

    out = pl.pallas_call(
        conv1x1_bn_nchw_kernel,
        out_shape=jax.ShapeDtypeStruct((N, cout, hw_p), out_dtype),
        grid=grid,
        in_specs=[
            # activations: one image / one spatial tile per step; batch dim squeezed out
            pl.BlockSpec((None, cin, thw), lambda n, j: (n, 0, j)),
            pl.BlockSpec((cout, cin), lambda n, j: (0, 0)),   # weight: grid-invariant
            pl.BlockSpec((cout, 1), lambda n, j: (0, 0)),     # bias:   grid-invariant
        ],
        out_specs=pl.BlockSpec((None, cout, thw), lambda n, j: (n, 0, j)),
        compiler_params=pltpu.CompilerParams(
            dimension_semantics=("parallel", "parallel"),
            vmem_limit_bytes=_vmem_limit_bytes(
                cin * thw * 4, cout * thw * out_isize,
                w_t.size * 2 + b.size * 4),
        ),
        cost_estimate=cost,
    )(x3, w_t, b)

    return out[:, :, :HW].reshape(N, cout, H, W)


def conv1x1_linear_forward_nhwc(x_nhwc, params, stride=1, tm=512,
                                out_dtype=jnp.bfloat16):
    """Channels-last entry point for NHWC networks.

    x_nhwc: (N, H, W, Cin) f32. Returns (N, H_out, W_out, Cout) out_dtype.
    """
    w = params["w_folded"]               # (Cin, Cout_p) bf16
    b = params["b_row"]                  # (1, Cout_p)   f32
    cin = params["in_channels"]
    cout = params["out_channels"]
    cout_p = w.shape[1]

    if stride > 1:
        x_nhwc = x_nhwc[:, ::stride, ::stride, :]

    N, H, W, C = x_nhwc.shape
    assert C == cin
    M = N * H * W

    # Adaptive row tile (16 = bf16 sublane granule); prefer >= 2 trips for v7x's 2 TCs.
    m16 = _round_up(M, 16)
    tm_eff = min(tm, m16)
    if m16 // tm_eff < 2 and m16 >= 32:
        tm_eff = _round_up(m16 // 2, 16)
    m_p = _round_up(m16, tm_eff)

    x2d = x_nhwc.reshape(M, C)           # keep f32; cast to bf16 inside the kernel
    if m_p != M:
        x2d = jnp.pad(x2d, ((0, m_p - M), (0, 0)))

    out_isize = jnp.dtype(out_dtype).itemsize
    grid = (m_p // tm_eff,)
    cost = pl.CostEstimate(
        flops=2 * m_p * cin * cout_p,
        transcendentals=0,
        bytes_accessed=(m_p * cin * 4 + w.size * 2 + b.size * 4
                        + m_p * cout_p * out_isize),
    )

    out = pl.pallas_call(
        conv1x1_bn_nhwc_kernel,
        out_shape=jax.ShapeDtypeStruct((m_p, cout_p), out_dtype),
        grid=grid,
        in_specs=[
            pl.BlockSpec((tm_eff, cin), lambda i: (i, 0)),      # activations: row-tiled
            pl.BlockSpec((cin, cout_p), lambda i: (0, 0)),      # weight: grid-invariant
            pl.BlockSpec((1, cout_p), lambda i: (0, 0)),        # bias:   grid-invariant
        ],
        out_specs=pl.BlockSpec((tm_eff, cout_p), lambda i: (i, 0)),
        compiler_params=pltpu.CompilerParams(
            dimension_semantics=("parallel",),
            vmem_limit_bytes=_vmem_limit_bytes(
                tm_eff * cin * 4, tm_eff * cout_p * out_isize,
                w.size * 2 + b.size * 4),
        ),
        cost_estimate=cost,
    )(x2d, w, b)

    return out[:M, :cout].reshape(N, H, W, cout)


# --------------------------- parameter construction --------------------------
def make_params(key, in_channels, out_channels):
    k1, k2, k3, k4, k5 = jax.random.split(key, 5)
    # PyTorch-layout conv weight (OIHW), no bias.
    w = jax.random.normal(k1, (out_channels, in_channels, 1, 1), jnp.float32) * 0.1
    gamma = 1.0 + 0.1 * jax.random.normal(k2, (out_channels,), jnp.float32)
    beta = 0.1 * jax.random.normal(k3, (out_channels,), jnp.float32)
    mean = 0.1 * jax.random.normal(k4, (out_channels,), jnp.float32)
    var = jax.random.uniform(k5, (out_channels,), jnp.float32, 0.5, 1.5)

    # Fold BN (eval mode) into the conv weight / bias (fold done in f32, cast once to bf16).
    s = gamma / jnp.sqrt(var + BN_EPS)                     # (Cout,)
    b = beta - mean * s                                    # (Cout,)
    w2 = w[:, :, 0, 0]                                     # (Cout, Cin)
    w_scaled = w2 * s[:, None]                             # per-output-channel scale

    # NCHW-native kernel operands: no channel padding needed at all.
    w_t_folded = w_scaled.astype(jnp.bfloat16)             # (Cout, Cin) bf16
    b_col = b[:, None].astype(jnp.float32)                 # (Cout, 1)   f32

    # NHWC-native kernel operands: pad only Cout to 128 (output lane density).
    cout_p = _round_up(out_channels, LANE)
    w_folded = jnp.zeros((in_channels, cout_p), jnp.float32)
    w_folded = w_folded.at[:, :out_channels].set(w_scaled.T).astype(jnp.bfloat16)
    b_row = jnp.zeros((1, cout_p), jnp.float32).at[0, :out_channels].set(b)

    kernel_params = dict(
        w_t_folded=w_t_folded, b_col=b_col,
        w_folded=w_folded, b_row=b_row,
        in_channels=in_channels, out_channels=out_channels,
    )
    torch_params = dict(w=w, gamma=gamma, beta=beta, mean=mean, var=var)
    return kernel_params, torch_params


# ------------------------- pure-JAX (PyTorch-equivalent) ---------------------
def ref_forward(x_nchw, tp, stride=1):
    dn = ("NCHW", "OIHW", "NCHW")
    y = lax.conv_general_dilated(x_nchw, tp["w"], (stride, stride), "VALID",
                                 dimension_numbers=dn)
    s = tp["gamma"] / jnp.sqrt(tp["var"] + BN_EPS)
    b = tp["beta"] - tp["mean"] * s
    return y * s[None, :, None, None] + b[None, :, None, None]


# ----------------------------------- main ------------------------------------
if __name__ == "__main__":
    N, in_channels, out_channels, H, W = 2, 32, 64, 16, 16

    key = jax.random.PRNGKey(0)
    kx, kp = jax.random.split(key)
    x = jax.random.normal(kx, (N, in_channels, H, W), jnp.float32)

    kernel_params, torch_params = make_params(kp, in_channels, out_channels)

    for stride in (1, 2):
        ref = np.asarray(jax.block_until_ready(ref_forward(x, torch_params, stride=stride)))

        # Primary path: NCHW-native kernel (no layout transposes).
        out = jax.block_until_ready(conv1x1_linear_forward(x, kernel_params, stride=stride))
        out_f32 = np.asarray(out.astype(jnp.float32))
        # Tolerance accounts for bf16 matmul operands + bf16 output store (f32 accumulate).
        np.testing.assert_allclose(out_f32, ref, rtol=5e-2, atol=5e-2)

        # NHWC-native path (used when the surrounding network is channels-last).
        x_nhwc = jnp.transpose(x, (0, 2, 3, 1))
        out2 = jax.block_until_ready(
            conv1x1_linear_forward_nhwc(x_nhwc, kernel_params, stride=stride))
        out2_f32 = np.asarray(jnp.transpose(out2, (0, 3, 1, 2)).astype(jnp.float32))
        np.testing.assert_allclose(out2_f32, ref, rtol=5e-2, atol=5e-2)

    print("KERNEL_OK")
</pallas_src>

<mosaic_0001>
module attributes {stable_mosaic.version = 11 : i64} {
  func.func @conv1x1_bn_nchw_kernel(%arg0: i32, %arg1: i32, %arg2: memref<1x32x256xf32, #tpu.memory_space<vmem>>, %arg3: memref<64x32xbf16, #tpu.memory_space<vmem>>, %arg4: memref<64x1xf32, #tpu.memory_space<vmem>>, %arg5: memref<1x64x256xbf16, #tpu.memory_space<vmem>>) attributes {dimension_semantics = [#tpu.dimension_semantics<parallel>, #tpu.dimension_semantics<parallel>], iteration_bounds = array<i64: 2, 1>, scalar_prefetch = 0 : i64, scratch_operands = 0 : i64, tpu.core_type = #tpu.core_type<tc>, window_params = [{transform_indices = @transform_0, window_bounds = array<i64: 1, 32, 256>}, {pipeline_mode = #tpu.pipeline_mode<synchronous>, transform_indices = @transform_1, window_bounds = array<i64: 64, 32>}, {pipeline_mode = #tpu.pipeline_mode<synchronous>, transform_indices = @transform_2, window_bounds = array<i64: 64, 1>}, {transform_indices = @transform_3, window_bounds = array<i64: 1, 64, 256>}]} {
    %c0 = arith.constant 0 : index
    %c0_0 = arith.constant 0 : index
    %c0_1 = arith.constant 0 : index
    %0 = vector.load %arg2[%c0, %c0_0, %c0_1] : memref<1x32x256xf32, #tpu.memory_space<vmem>>, vector<1x32x256xf32>
    %1 = vector.shape_cast %0 : vector<1x32x256xf32> to vector<32x256xf32>
    %2 = arith.truncf %1 : vector<32x256xf32> to vector<32x256xbf16>
    %c0_2 = arith.constant 0 : index
    %c0_3 = arith.constant 0 : index
    %3 = vector.load %arg3[%c0_2, %c0_3] : memref<64x32xbf16, #tpu.memory_space<vmem>>, vector<64x32xbf16>
    %cst = arith.constant dense<0.000000e+00> : vector<64x256xf32>
    %4 = tpu.matmul %3, %2, %cst {dimension_numbers = #tpu.dot_dimension_numbers<[1], [0], [0], [1], [0, 0, 1, 1], [], []>} : vector<64x32xbf16>, vector<32x256xbf16>, vector<64x256xf32> -> vector<64x256xf32>
    %c0_4 = arith.constant 0 : index
    %c0_5 = arith.constant 0 : index
    %5 = vector.load %arg4[%c0_4, %c0_5] : memref<64x1xf32, #tpu.memory_space<vmem>>, vector<64x1xf32>
    %6 = vector.broadcast %5 : vector<64x1xf32> to vector<64x256xf32>
    %7 = arith.addf %4, %6 : vector<64x256xf32>
    %8 = arith.truncf %7 : vector<64x256xf32> to vector<64x256xbf16>
    %c0_6 = arith.constant 0 : index
    %c0_7 = arith.constant 0 : index
    %c0_8 = arith.constant 0 : index
    %9 = vector.load %arg5[%c0_6, %c0_7, %c0_8] : memref<1x64x256xbf16, #tpu.memory_space<vmem>>, vector<1x64x256xbf16>
    %10 = vector.shape_cast %9 : vector<1x64x256xbf16> to vector<64x256xbf16>
    %11 = vector.shape_cast %8 : vector<64x256xbf16> to vector<1x64x256xbf16>
    tpu.vector_store %arg5[%c0_6, %c0_7, %c0_8], %11 {strides = array<i32>} : memref<1x64x256xbf16, #tpu.memory_space<vmem>>, vector<1x64x256xbf16>,
    return
  }
  func.func @transform_0(%arg0: i32, %arg1: i32) -> (i32, i32, i32) {
    %c0_i32 = arith.constant 0 : i32
    %c0_i32_0 = arith.constant 0 : i32
    return %arg0, %c0_i32, %arg1 : i32, i32, i32
  }
  func.func @transform_1(%arg0: i32, %arg1: i32) -> (i32, i32) {
    %c0_i32 = arith.constant 0 : i32
    %c0_i32_0 = arith.constant 0 : i32
    %c0_i32_1 = arith.constant 0 : i32
    return %c0_i32, %c0_i32_0 : i32, i32
  }
  func.func @transform_2(%arg0: i32, %arg1: i32) -> (i32, i32) {
    %c0_i32 = arith.constant 0 : i32
    %c0_i32_0 = arith.constant 0 : i32
    %c0_i32_1 = arith.constant 0 : i32
    return %c0_i32, %c0_i32_0 : i32, i32
  }
  func.func @transform_3(%arg0: i32, %arg1: i32) -> (i32, i32, i32) {
    %c0_i32 = arith.constant 0 : i32
    %c0_i32_0 = arith.constant 0 : i32
    return %arg0, %c0_i32, %arg1 : i32, i32, i32
  }
}

</mosaic_0001>

<bundles_post_ra>
// kernel: tpu_custom_call.1
= control target key start
LH: loop header
LB: loop body
LE: loop exit
PB: predicated region body
PF: predicated region fallthrough
CT: control target
= control target key end

     0   :  { %8 = vsyncpa [#allocation3], 0  ;;  %s1032_s0 = inlined_call_operand.hbm [shape: f32[2,32,256], index: 0, kind: input, shape index: {}]   ;;  %s1033_s1 = inlined_call_operand.vmem [shape: bf16[64,32], index: 1, kind: input, shape index: {}]   ;;  %s1034_s2 = inlined_call_operand.vmem [shape: f32[64,1], index: 2, kind: input, shape index: {}]   ;;  %s1035_s3 = inlined_call_operand.hbm [shape: bf16[2,64,256], index: 3, kind: output, shape index: {}]  }
   0x1   :  { %10 = vsyncpa [#allocation3 + $0x1], 0 }
   0x2   :  { %11 = vsyncpa [#allocation4], 0 }
   0x3   :  { %13 = vsyncpa [#allocation4 + $0x1], 0  ;;  %s802_s12 = smov 0   ;;  %s804_s13 = smov 0  }
   0x4   :  { %s806_s14 = smov 0   ;;  %s808_s15 = smov 0  }
   0x5   :  { %s810_s16 = smov 0   ;;  %s812_s17 = smov 0  }
   0x6 LB: > { %s543_s18 = sadd.s32 4294967295, %s773_s17   ;;  %s544_s19 = sadd.s32 4294967294, %s773_s17   ;;  %s773_s17 = sphi %s812_s17, %s19_s17   ;;  %s769_s16 = sphi %s810_s16, %s1050_s16   ;;  %s765_s15 = sphi %s808_s15, %s1049_s15   ;;  %s761_s14 = sphi %s806_s14, %s1048_s14   ;;  %s757_s13 = sphi %s804_s13, %s1047_s13   ;;  %s753_s12 = sphi %s802_s12, %s1046_s12  }
   0x7   : > { %s31_s20 = sadd.s32 1, %s769_s16  ;;  %s40_s21 = sadd.s32 1, %s761_s14 }
   0x8   : > { %p33_p0 = scmp.ge.s32.totalorder %s31_s20, 2  ;;  %p47_p1 = scmp.ne.s32.totalorder %s761_s14, %s757_s13 }
   0x9   : > { %p48_p2 = scmp.eq.s32.totalorder %s773_s17, 0  ;;  %p53_p3 = scmp.ne.s32.totalorder %s757_s13, %s753_s12 }
   0xa   : > { %s1052_s20 = smov (%p33_p0, %s31_s20), 0  ;;  %p54_p5 = scmp.eq.s32.totalorder %s543_s18, 0 }
   0xb   : > { %p843_p4 = por %p48_p2, %p47_p1  ;;  %s35_s23 = ssub.s32 %s769_s16, %s1052_s20 }
   0xc   : > { %p121_p6 = scmp.eq.s32.totalorder %s543_s18, 1  ;;  %p38_p7 = scmp.eq.s32.totalorder %s35_s23, 0 }
   0xd   : > { %p849_p8 = por %p54_p5, %p53_p3  ;;  %p127_p10 = scmp.eq.s32.totalorder %s544_s19, 1 }
   0xe   : > { %p853_p9 = por %p121_p6, %p47_p1  ;;  %p600_p13 = scmp.lt.s32.totalorder %s773_s17, 2 }
   0xf   : > { %s858_s26 = scalar_select %p38_p7, %s761_s14, %s40_s21  }
  0x10   : > { %s1039_s25 = scalar_select %p853_p9, 1, 0 }
  0x11   : > { %p860_p11 = por %p127_p10, %p53_p3  ;;  %s153_s28 = sand.u32 1, %s761_s14  }
  0x12   : > { %s547_s29 = sshll.u32 %s153_s28, 6  ;;  %s574_s30 = sshll.u32 %s769_s16, 10 }
  0x13   : > { %s1040_s27 = scalar_select %p860_p11, 1, 0 }
  0x14   : > { %s871_s6 = scalar_lea.hbm %s1032_s0, %s574_s30  ;;  %s157_s7 = scalar_lea.vmem [#allocation2], %s547_s29 }
  0x15   : > { %s166_s8 = sshll.u32 %s157_s7, 4  ;;  %p877_p0 = pnand %p600_p13, %p843_p4  ;;  %s873_s8 = int_to_ptr.vmem [resolvable:$true] %s166_s8 }
  0x16   : > { %s882_s10 = scalar_lea.sflag [#allocation3], %s153_s28  ;;  %s661_s11 = scalar_lea.hbm %s871_s6, 1024 }
  0x17   : > { %p662_p2 = scmp.ne.s32.totalorder %s871_s6, %s661_s11  ;;  %p663_p3 = pneg %p877_p0 }
  0x18   : > { %s666_s21 = scalar_lea.hbm %s1032_s0, 2048  ;;  %p667_p4 = scmp.lt.u32.totalorder %s871_s6, %s1032_s0 }
  0x19   : > { %p664_p5 = pnand %p663_p3, %p662_p2  ;;  %p668_p7 = scmp.lt.u32.totalorder %s666_s21, %s661_s11 }
  0x1a   : > { %p670_p13 = scmp.lt.u32.totalorder %s661_s11, %s871_s6 }
  0x1b   : > { %p665_p6 = pneg %p664_p5  ;;  %p669_p10 = por %p668_p7, %p667_p4 }
  0x1d   : > { %p671_p12 = por %p670_p13, %p669_p10 }
  0x1f   : > { %p672_p1 = pnand %p671_p12, %p665_p6 }
  0x21   : > { %675 = shalt.err (!%p672_p1)
}
  0x22   : > { %s676_s28 = scalar_lea.vmem %s873_s8, 1024  ;;  %s775_s29 = smov [#allocation2]  }
  0x23   : > { %p677_p2 = scmp.ne.s32.totalorder %s873_s8, %s676_s28  ;;  %s681_s30 = sshll.u32 %s775_s29, 4  ;;  %s682_s30 = int_to_ptr.vmem [resolvable:$false] %s681_s30 }
  0x24   : > { %s683_s4 = scalar_lea.vmem %s682_s30, 2048  ;;  %p684_p9 = scmp.lt.s32.totalorder %s873_s8, %s682_s30 }
  0x25   : > { %p679_p5 = pnand %p677_p2, %p663_p3  ;;  %p685_p4 = scmp.lt.s32.totalorder %s683_s4, %s676_s28 }
  0x27   : > { %p680_p11 = pneg %p679_p5  ;;  %p686_p7 = por %p685_p4, %p684_p9 }
  0x29   : > { %p687_p10 = pnand %p686_p7, %p680_p11 }
  0x2b   : > { %690 = shalt.err (!%p687_p10)
}
  0x2c   : > { %s776_s5 = smov 256   ;;  %s777_s7 = smov 16  }
  0x2d   : > { %595 = dma.hbm_to_vmem [thread:$0]  (!%p877_p0), %s871_s6, 1024, %s873_s8, %s882_s10, %s776_s5, %s776_s5, %s777_s7  }
  0x2e   : > { %p174_p12 = scmp.lt.s32.totalorder %s773_s17, 3  ;;  %p1042_p1 = scmp.ge.s32.totalorder %s773_s17, 1 }
  0x30   : > { %p175_p3 = pnand %p1042_p1, %p174_p12 }
  0x31   : > { %s914_s11 = sand.u32 (!%p175_p3), 1, %s757_s13  }
  0x32   : > { %178 = sbr.rel (%p175_p3) target bundleno = 311 (0x137), region = 32  ;;  %s551_s18 = sshll.u32 (!%p175_p3), %s914_s11, 6 }
  0x33   : > { %s181_s19 = scalar_lea.sflag (!%p175_p3), [#allocation3], %s914_s11  ;;  %s184_s21 = scalar_lea.vmem (!%p175_p3), [#allocation2], %s551_s18 }
  0x39   : > { %744 = dma.done.wait (%p849_p8), %s181_s19, 1024  }
  0x3a   : > { %746 = vsyncadd (%p849_p8), %s181_s19, 4294966272  ;;  %v778_v0 = vmov 0   ;;  %v211_v1 = vld [vmem:[%s184_s21 + $0x8] sm:$0xff]  ;;  %v213_v2 = vld [vmem:[%s184_s21 + $0x18] sm:$0xff]  ;;  %vm298_vm0 = vcmask 261120   ;;  %s966_s30 = scalar_lea.vmem [#allocation5], %s551_s18 }
  0x3b   : > { %343 = vmatprep.mubr.bf16.mxu0 %v778_v0  ;;  %363 = vmatprep.mubr.bf16.mxu1 %v778_v0  ;;  %v210_v3 = vld [vmem:[%s184_s21] sm:$0xff]  ;;  %v219_v4 = vpack.c.bf16 %v213_v2, %v211_v1  ;;  %v212_v5 = vld [vmem:[%s184_s21 + $0x10] sm:$0xff]  ;;  %v215_v6 = vld [vmem:[%s184_s21 + $0x28] sm:$0xff]  ;;  %s456_s4 = sshll.u32 %s966_s30, 4  ;;  %s583_s18 = sshll.u32 %s765_s15, 10  ;;  %s974_s4 = int_to_ptr.vmem [resolvable:$true] %s456_s4 }
  0x3c   : > { %656 = vset.pattern.permute.xlu1 %v778_v0  ;;  %655 = vset.pattern.permute.xlu0 %v778_v0  ;;  %v217_v7 = vld [vmem:[%s184_s21 + $0x38] sm:$0xff]  ;;  %v218_v8 = vpack.c.bf16 %v212_v5, %v210_v3  ;;  %v214_v10 = vld [vmem:[%s184_s21 + $0x20] sm:$0xff]  ;;  %v216_v11 = vld [vmem:[%s184_s21 + $0x30] sm:$0xff]  ;;  %s979_s19 = scalar_lea.hbm %s1035_s3, %s583_s18  ;;  %s441_s15 = scalar_lea.sflag [#allocation4], %s914_s11 }
  0x3d   : > { %v221_v9 = vpack.c.bf16 %v217_v7, %v215_v6  ;;  %311 = vmatprep.subr.bf16.mxu0 %v219_v4  ;;  %584 = vmatprep.subr.bf16.mxu1 %v219_v4  ;;  %v220_v12 = vpack.c.bf16 %v216_v11, %v214_v10  ;;  %v232_v13 = vld [vmem:[%s1034_s2 + $0x10] sm:$0xff]  ;;  %v657_v14 = vld [vmem:[%s1033_s1] sm:$0xff]   ;;  %v233_v17 = vld [vmem:[%s1034_s2 + $0x18] sm:$0xff]  ;;  %s691_s21 = scalar_lea.vmem %s974_s4, 1024  ;;  %p1043_p9 = scmp.ne.s32.totalorder %s1039_s25, 0 }
  0x3e   : > { %312 = vmatpush1.bf16.msra.mxu0 %v218_v8  ;;  %586 = vmatpush1.bf16.msra.mxu1 %v218_v8  ;;  %v658_v15 = vld [vmem:[%s1033_s1 + $0x10] sm:$0xff]   ;;  %v230_v16 = vld [vmem:[%s1034_s2] sm:$0xff]  ;;  %v231_v18 = vld [vmem:[%s1034_s2 + $0x8] sm:$0xff]  ;;  %p692_p8 = scmp.ne.s32.totalorder %s974_s4, %s691_s21  ;;  %s779_s24 = smov [#allocation5]  }
  0x3f   : > { %313 = vmatprep.subr.bf16.mxu0 %v221_v9  ;;  %585 = vmatprep.subr.bf16.mxu1 %v221_v9  ;;  %v235_v19 = vld [vmem:[%s1034_s2 + $0x28] sm:$0xff]  ;;  %v234_v20 = vld [vmem:[%s1034_s2 + $0x20] sm:$0xff]  ;;  %v660_v22 = vld [vmem:[%s1033_s1 + $0x18] sm:$0xff]   ;;  %s695_s6 = sshll.u32 %s779_s24, 4  ;;  %s696_s6 = int_to_ptr.vmem [resolvable:$false] %s695_s6 }
  0x40   : > { %250 = vperm.xlu1 %656, %v232_v13   ;;  %240 = vperm.xlu0 %655, %v230_v16   ;;  %v659_v21 = vld [vmem:[%s1033_s1 + $0x8] sm:$0xff]   ;;  %v237_v23 = vld [vmem:[%s1034_s2 + $0x38] sm:$0xff]  ;;  %v236_v24 = vld [vmem:[%s1034_s2 + $0x30] sm:$0xff]  ;;  %p693_p11 = pnand %p692_p8, %p1043_p9  ;;  %s697_s8 = scalar_lea.vmem %s696_s6, 2048 }
  0x41   : > { %p698_p6 = scmp.lt.s32.totalorder %s974_s4, %s696_s6  ;;  %p699_p13 = scmp.lt.s32.totalorder %s697_s8, %s691_s21 }
  0x42   : > { %314 = vmatpush1.bf16.msra.mxu0 %v220_v12  ;;  %587 = vmatpush1.bf16.msra.mxu1 %v220_v12  ;;  %p694_p0 = pneg %p693_p11 }
  0x43   : > { %p700_p2 = por %p699_p13, %p698_p6 }
  0x44   : > { %255 = vperm.xlu1 %656, %v233_v17   ;;  %245 = vperm.xlu0 %655, %v231_v18  }
  0x45   : > { %557 = vmatmul.mubr.msk.bf16.vlgmr.msra.gmra.mrb[0].mxu0 %vm298_vm0, %v657_v14  ;;  %559 = vmatmul.mubr.msk.bf16.vlgmr.msra.gmra.mrb[0].mxu1 %vm298_vm0, %v658_v15  ;;  %p701_p5 = pnand %p700_p2, %p694_p0 }
  0x46   : > { %353 = vmatprep.mubr.bf16.mxu0 %v778_v0  ;;  %373 = vmatprep.mubr.bf16.mxu1 %v778_v0 }
  0x48   : > { %265 = vperm.xlu1 %656, %v235_v19   ;;  %260 = vperm.xlu0 %655, %v234_v20  }
  0x4c   : > { %275 = vperm.xlu1 %656, %v237_v23   ;;  %270 = vperm.xlu0 %655, %v236_v24  }
  0x4d   : > { %558 = vmatmul.mubr.msk.bf16.gmra.mrb[4].mxu0 %vm298_vm0, %v659_v21  ;;  %560 = vmatmul.mubr.msk.bf16.gmra.mrb[4].mxu1 %vm298_vm0, %v660_v22 }
  0xbf   : > { %v251_v25 = vpop.permute.xlu1 %250  ;;  %v241_v26 = vpop.permute.xlu0 %240 }
  0xc3   : > { %v256_v27 = vpop.permute.xlu1 %255  ;;  %v246_v28 = vpop.permute.xlu0 %245 }
  0xc7   : > { %v266_v29 = vpop.permute.xlu1 %265  ;;  %v261_v30 = vpop.permute.xlu0 %260 }
  0xcb   : > { %v276_v51 = vpop.permute.xlu1 %275  ;;  %v271_v52 = vpop.permute.xlu0 %270 }
 0x118   : > { %v345_v31 = vpop.f32.mrb[0].mxu0  ;;  %v365_v32 = vpop.f32.mrb[0].mxu1 }
 0x119   : > { %v346_v33 = vadd.f32 %v345_v31, %v241_v26  ;;  %v366_v34 = vadd.f32 %v365_v32, %v261_v30  ;;  %v347_v35 = vpop.f32.mrb[1].mxu0  ;;  %v367_v36 = vpop.f32.mrb[1].mxu1 }
 0x11a   : > { %v348_v37 = vadd.f32 %v347_v35, %v241_v26  ;;  %v368_v38 = vadd.f32 %v367_v36, %v261_v30  ;;  %v349_v39 = vpop.f32.mrb[2].mxu0  ;;  %v369_v40 = vpop.f32.mrb[2].mxu1 }
 0x11b   : > { %v350_v41 = vadd.f32 %v349_v39, %v246_v28  ;;  %v370_v42 = vadd.f32 %v369_v40, %v266_v29  ;;  %v351_v43 = vpop.f32.mrb[3].mxu0  ;;  %v371_v44 = vpop.f32.mrb[3].mxu1 }
 0x11c   : > { %v575_v45 = vpack.c.bf16 %v348_v37, %v346_v33  ;;  %v579_v46 = vpack.c.bf16 %v368_v38, %v366_v34  ;;  %v352_v47 = vadd.f32 %v351_v43, %v246_v28  ;;  %v372_v48 = vadd.f32 %v371_v44, %v266_v29 }
 0x11e   : > { %432 = vst [vmem:[%s966_s30] sm:$0xff] %v575_v45  ;;  %436 = vst [vmem:[%s966_s30 + $0x20] sm:$0xff] %v579_v46  ;;  %v576_v49 = vpack.c.bf16 %v352_v47, %v350_v41  ;;  %v580_v50 = vpack.c.bf16 %v372_v48, %v370_v42 }
 0x120   : > { %433 = vst [vmem:[%s966_s30 + $0x8] sm:$0xff] %v576_v49  ;;  %437 = vst [vmem:[%s966_s30 + $0x28] sm:$0xff] %v580_v50  ;;  %v355_v53 = vpop.f32.mrb[4].mxu0  ;;  %v375_v54 = vpop.f32.mrb[4].mxu1 }
 0x121   : > { %v356_v55 = vadd.f32 %v355_v53, %v251_v25  ;;  %v376_v56 = vadd.f32 %v375_v54, %v271_v52  ;;  %v357_v57 = vpop.f32.mrb[5].mxu0  ;;  %v377_v58 = vpop.f32.mrb[5].mxu1 }
 0x122   : > { %v358_v59 = vadd.f32 %v357_v57, %v251_v25  ;;  %v378_v60 = vadd.f32 %v377_v58, %v271_v52  ;;  %v359_v61 = vpop.f32.mrb[6].mxu0  ;;  %v379_v62 = vpop.f32.mrb[6].mxu1 }
 0x123   : > { %v360_v63 = vadd.f32 %v359_v61, %v256_v27  ;;  %v380_v0 = vadd.f32 %v379_v62, %v276_v51  ;;  %v361_v1 = vpop.f32.mrb[7].mxu0  ;;  %v381_v2 = vpop.f32.mrb[7].mxu1 }
 0x124   : > { %v577_v3 = vpack.c.bf16 %v358_v59, %v356_v55  ;;  %v581_v4 = vpack.c.bf16 %v378_v60, %v376_v56  ;;  %v362_v5 = vadd.f32 %v361_v1, %v256_v27  ;;  %v382_v6 = vadd.f32 %v381_v2, %v276_v51 }
 0x126   : > { %434 = vst [vmem:[%s966_s30 + $0x10] sm:$0xff] %v577_v3  ;;  %438 = vst [vmem:[%s966_s30 + $0x30] sm:$0xff] %v581_v4  ;;  %v578_v7 = vpack.c.bf16 %v362_v5, %v360_v63  ;;  %v582_v8 = vpack.c.bf16 %v382_v6, %v380_v0 }
 0x128   : > { %435 = vst [vmem:[%s966_s30 + $0x18] sm:$0xff] %v578_v7  ;;  %439 = vst [vmem:[%s966_s30 + $0x38] sm:$0xff] %v582_v8 }
 0x129   : > { %704 = shalt.err (!%p701_p5)
}
 0x12a   : > { %s705_s9 = scalar_lea.hbm %s979_s19, 1024  ;;  %s709_s23 = scalar_lea.hbm %s1035_s3, 2048 }
 0x12b   : > { %p706_p4 = scmp.ne.s32.totalorder %s979_s19, %s705_s9  ;;  %p710_p12 = scmp.lt.u32.totalorder %s979_s19, %s1035_s3 }
 0x12c   : > { %p711_p1 = scmp.lt.u32.totalorder %s709_s23, %s705_s9  ;;  %p713_p8 = scmp.lt.u32.totalorder %s705_s9, %s979_s19 }
 0x12d   : > { %p707_p7 = pnand %p706_p4, %p1043_p9 }
 0x12e   : > { %p712_p3 = por %p711_p1, %p710_p12 }
 0x12f   : > { %p708_p10 = pneg %p707_p7 }
 0x130   : > { %p714_p11 = por %p713_p8, %p712_p3 }
 0x132   : > { %p715_p0 = pnand %p714_p11, %p708_p10 }
 0x134   : > { %718 = shalt.err (!%p715_p0)
}
 0x135   : > { %s780_s30 = smov 128   ;;  %s781_s18 = smov 8  }
 0x136   : > { %590 = dma.vmem_to_hbm [thread:$0]  (%p1043_p9), %s974_s4, 1024, %s979_s19, %s441_s15, %s780_s30, %s780_s30, %s781_s18  }
 0x137 PF: > { %s471_s5 = sand.u32 1, %s753_s12   ;;  %p1044_p6 = scmp.ne.s32.totalorder %s1040_s27, 0 }
 0x138   : > { %p1045_p13 = scmp.ge.s32.totalorder %s773_s17, 2  ;;  %s472_s7 = scalar_lea.sflag [#allocation4], %s471_s5 }
 0x13a   : > { %p597_p2 = pnand %p1045_p13, %p1044_p6 }
 0x13c   : > { %748 = dma.done.wait (!%p597_p2), %s472_s7, 1024  }
 0x13d   : > { %750 = vsyncadd (!%p597_p2), %s472_s7, 4294966272  ;;  %s19_s17 = sadd.s32 1, %s773_s17   ;;  %s1046_s12 = smov %s757_s13 }
 0x13e   : > { %p16_p5 = scmp.ge.s32.totalorder %s19_s17, 4   ;;  %s1047_s13 = smov %s761_s14 }
 0x13f   : > { %s1048_s14 = smov %s858_s26  ;;  %s1049_s15 = smov %s769_s16 }
 0x140   : > { %s1050_s16 = smov %s1052_s20  ;;  %18 = sbr.rel (!%p16_p5) target bundleno = 6 (0x6), region = 77 }
 0x147   :  { %477 = vsyncpa [#allocation3], 1 }
 0x148   :  { %479 = vsyncpa [#allocation3 + $0x1], 1 }
 0x149   :  { %480 = vsyncpa [#allocation4], 1 }
 0x14a   :  { %482 = vsyncpa [#allocation4 + $0x1], 1 }

</bundles_post_ra>
